<compile_context>
chip_gen: v6e
topology: v6e:2x2x1
jax: 0.10.0
libtpu: 0.0.40
codegen_flags: <defaults>
</compile_context>

<pallas_src>
import functools

import jax
import jax.numpy as jnp
from jax.experimental import pallas as pl
from jax.experimental.pallas import tpu as pltpu


def _cdiv(a: int, b: int) -> int:
    return -(-a // b)


def _round_up(a: int, b: int) -> int:
    return _cdiv(a, b) * b


def _num_tensorcores_per_chip() -> int:
    """Best-effort detection: 2 TensorCores per chip on v7x (and v4/v5p), else 1."""
    try:
        kind = jax.devices()[0].device_kind.lower().replace(" ", "")
    except Exception:
        return 1
    if "v7" in kind or kind.startswith("tpu7"):
        return 2
    if "lite" in kind or "v5e" in kind or "v6" in kind:
        return 1
    if "v4" in kind or "v5p" in kind:
        return 2
    return 1


def _lane_fold_factor(rows: int, m: int) -> int:
    """Smallest k with (k*m) % 128 == 0 and rows % k == 0 (1 if m already aligned)."""
    if m % 128 == 0:
        return 1
    for k in range(2, 129):
        if (k * m) % 128 == 0 and rows % k == 0:
            return k
    return 1


def _bmsq_kernel(x_ref, o_ref, acc_ref, *, acc_sub, tile_rows, total_rows,
                 needs_mask, inv_n, rsqrt_dim_val_sq, scaled):
    """Grid = (row partitions [parallel], row-tiles [reduction, innermost])."""
    r = pl.program_id(1)
    n_r = pl.num_programs(1)

    @pl.when(r == 0)
    def _():
        acc_ref[...] = jnp.zeros_like(acc_ref)

    x = x_ref[...].astype(jnp.float32)           # (tile_rows, tile_m)
    xsq = x * x
    tile_m = xsq.shape[-1]
    groups = tile_rows // acc_sub

    def _accumulate(vals):
        # (tile_rows, tile_m) -> (groups, acc_sub, tile_m); axis-0 sum is pure
        # VPU work into acc_sub independent add chains (no cross-sublane traffic).
        acc_ref[...] += jnp.sum(vals.reshape(groups, acc_sub, tile_m), axis=0)

    if needs_mask:
        gb = pl.program_id(0) * n_r + r          # global row-block index
        is_full = (gb + 1) * tile_rows <= total_rows

        @pl.when(is_full)
        def _():
            _accumulate(xsq)

        @pl.when(jnp.logical_not(is_full))
        def _():
            row = jax.lax.broadcasted_iota(jnp.int32, xsq.shape, 0)
            valid = (gb * tile_rows + row) < total_rows
            _accumulate(jnp.where(valid, xsq, 0.0))
    else:
        _accumulate(xsq)

    @pl.when(r == n_r - 1)
    def _():
        # Single acc_sub -> 1 cross-sublane (XLU) reduce, once per partition.
        res = jnp.sum(acc_ref[...], axis=0, keepdims=True)   # (1, tile_m)
        res = res * inv_n
        if scaled:
            res = res * rsqrt_dim_val_sq
        o_ref[...] = res[None]                                # (1, 1, tile_m)


def batch_mean_sq_norm_per_irrep(x_k, rsqrt_dim_val_sq: float, scaled: bool):
    """Pallas equivalent of BatchMeanSqNormPerIrrep.forward for x_k of shape [N, D, M]."""
    N, D, M = x_k.shape
    R = N * D
    out_dtype = x_k.dtype
    itemsize = x_k.dtype.itemsize

    # Fold rows into lanes when M is lane-sparse (free reshape; avoids lane
    # padding of every input vreg in VMEM).
    k = _lane_fold_factor(R, M)
    R_eff = R // k
    M_eff = M * k
    x2 = x_k.reshape(R_eff, M_eff)

    # Row-tile sizing: ~12 MiB per pipeline buffer; double buffer fits v7x VMEM.
    budget = 12 * 1024 * 1024
    budget_rows = max(32, (budget // max(1, M_eff * itemsize)) // 32 * 32)

    # 2 parallel row partitions on multi-TC chips (v7x); 1 elsewhere so every
    # DMA is a fully contiguous full-width row block.
    num_par = 2 if (_num_tensorcores_per_chip() >= 2 and R_eff >= 64) else 1

    tile_rows = budget_rows
    t_per_part = 1
    if num_par == 2:
        half = _cdiv(R_eff, 2)
        t_per_part = max(1, _cdiv(half, budget_rows))
        tile_rows = _round_up(_cdiv(half, t_per_part), 32)
        if t_per_part * tile_rows >= R_eff:
            num_par = 1                       # 2nd partition would start out of bounds
    if num_par == 1:
        r_ceil = _round_up(R_eff, 8)
        if budget_rows >= r_ceil:
            tile_rows = r_ceil                # single block covers all rows
            t_per_part = 1
        else:
            tile_rows = budget_rows
            t_per_part = _cdiv(R_eff, tile_rows)

    acc_sub = 32 if tile_rows % 32 == 0 else (16 if tile_rows % 16 == 0 else 8)
    needs_mask = (num_par * t_per_part * tile_rows) != R_eff

    grid = (num_par, t_per_part)              # (parallel, reduction innermost)

    tile_bytes = tile_rows * M_eff * itemsize
    n_buf = 3 if (tile_bytes < 2 * 1024 * 1024 and t_per_part >= 3) else 2
    if n_buf == 3:
        in_spec = pl.BlockSpec((tile_rows, M_eff),
                               lambda p, r: (p * t_per_part + r, 0),
                               pipeline_mode=pl.Buffered(3))
    else:
        in_spec = pl.BlockSpec((tile_rows, M_eff),
                               lambda p, r: (p * t_per_part + r, 0))

    kernel = functools.partial(
        _bmsq_kernel,
        acc_sub=acc_sub,
        tile_rows=tile_rows,
        total_rows=R_eff,
        needs_mask=needs_mask,
        inv_n=1.0 / float(N),
        rsqrt_dim_val_sq=float(rsqrt_dim_val_sq),
        scaled=bool(scaled),
    )

    acc_bytes = acc_sub * M_eff * 4
    out_bytes = 8 * M_eff * 4
    vmem_limit = n_buf * tile_bytes + acc_bytes + 2 * out_bytes + (2 << 20)
    vmem_limit = int(min(max(vmem_limit, 4 << 20), 112 << 20))

    cost = pl.CostEstimate(
        flops=2 * R * M,
        transcendentals=0,
        bytes_accessed=R * M * itemsize + num_par * M_eff * 4,
    )

    out = pl.pallas_call(
        kernel,
        out_shape=jax.ShapeDtypeStruct((num_par, 1, M_eff), jnp.float32),
        grid_spec=pltpu.PrefetchScalarGridSpec(
            num_scalar_prefetch=0,
            grid=grid,
            in_specs=[in_spec],
            out_specs=pl.BlockSpec((1, 1, M_eff), lambda p, r: (p, 0, 0)),
            scratch_shapes=[pltpu.VMEM((acc_sub, M_eff), jnp.float32)],
        ),
        compiler_params=pltpu.CompilerParams(
            dimension_semantics=("parallel", "arbitrary"),
            vmem_limit_bytes=vmem_limit,
        ),
        cost_estimate=cost,
    )(x2)

    out = out.reshape(num_par, M_eff).sum(axis=0, keepdims=True)     # (1, M_eff)
    if k > 1:
        out = out.reshape(k, M).sum(axis=0, keepdims=True)           # fold lanes back
    return out.astype(out_dtype)


def _reference(x, rsqrt_dim_val_sq, scaled):
    N = x.shape[0]
    s = jnp.sum(x.astype(jnp.float32) ** 2, axis=-2, keepdims=True)  # (N, 1, M)
    s = jnp.sum(s, axis=0) / N                                       # (1, M)
    if scaled:
        s = s * rsqrt_dim_val_sq
    return s.astype(x.dtype)


if __name__ == "__main__":
    key = jax.random.PRNGKey(0)

    # Case 1: "module parameters" for an l=1 irrep (dim 3), scaled statistic.
    D_IRREP = 3
    rsqrt_dim_val_sq = 1.0 / D_IRREP            # rsqrt(dim)**2 = 1/dim
    N, M = 8, 128
    k1, k2 = jax.random.split(key)
    x1 = jax.random.normal(k1, (N, D_IRREP, M), dtype=jnp.float32)
    out1 = jax.block_until_ready(batch_mean_sq_norm_per_irrep(x1, rsqrt_dim_val_sq, True))
    ref1 = _reference(x1, rsqrt_dim_val_sq, True)
    assert out1.shape == (1, M), out1.shape
    assert jnp.allclose(out1, ref1, rtol=1e-5, atol=1e-5), float(jnp.max(jnp.abs(out1 - ref1)))

    # Case 2: small-M path (lane fold + masked partial tail block), unscaled.
    x2 = jax.random.normal(k2, (4, 2, 32), dtype=jnp.float32)
    out2 = jax.block_until_ready(batch_mean_sq_norm_per_irrep(x2, 0.5, False))
    ref2 = _reference(x2, 0.5, False)
    assert out2.shape == (1, 32), out2.shape
    assert jnp.allclose(out2, ref2, rtol=1e-5, atol=1e-5), float(jnp.max(jnp.abs(out2 - ref2)))

    print("KERNEL_OK")
</pallas_src>

<mosaic_0001>
module attributes {stable_mosaic.version = 11 : i64} {
  func.func @_bmsq_kernel(%arg0: i32, %arg1: i32, %arg2: memref<24x128xf32, #tpu.memory_space<vmem>>, %arg3: memref<1x1x128xf32, #tpu.memory_space<vmem>>, %arg4: memref<8x128xf32, #tpu.memory_space<vmem>>) attributes {dimension_semantics = [#tpu.dimension_semantics<parallel>, #tpu.dimension_semantics<arbitrary>], iteration_bounds = array<i64: 1, 1>, scalar_prefetch = 0 : i64, scratch_operands = 1 : i64, tpu.core_type = #tpu.core_type<tc>, window_params = [{transform_indices = @transform_0, window_bounds = array<i64: 24, 128>}, {transform_indices = @transform_1, window_bounds = array<i64: 1, 1, 128>}]} {
    %c0_i32 = arith.constant 0 : i32
    %0 = arith.cmpi eq, %arg1, %c0_i32 : i32
    %1 = arith.extui %0 : i1 to i32
    %c0_i32_0 = arith.constant 0 : i32
    %2 = arith.cmpi ne, %1, %c0_i32_0 : i32
    scf.if %2 {
      %cst_8 = arith.constant 0.000000e+00 : f32
      %13 = vector.broadcast %cst_8 : f32 to vector<8x128xf32>
      %c0_9 = arith.constant 0 : index
      %c0_10 = arith.constant 0 : index
      %14 = vector.load %arg4[%c0_9, %c0_10] : memref<8x128xf32, #tpu.memory_space<vmem>>, vector<8x128xf32>
      tpu.vector_store %arg4[%c0_9, %c0_10], %13 {strides = array<i32>} : memref<8x128xf32, #tpu.memory_space<vmem>>, vector<8x128xf32>,
    } else {
    }
    %c0 = arith.constant 0 : index
    %c0_1 = arith.constant 0 : index
    %3 = vector.load %arg2[%c0, %c0_1] : memref<24x128xf32, #tpu.memory_space<vmem>>, vector<24x128xf32>
    %4 = arith.mulf %3, %3 : vector<24x128xf32>
    %c0_2 = arith.constant 0 : index
    %c0_3 = arith.constant 0 : index
    %5 = vector.load %arg4[%c0_2, %c0_3] : memref<8x128xf32, #tpu.memory_space<vmem>>, vector<8x128xf32>
    %6 = vector.shape_cast %4 : vector<24x128xf32> to vector<3x8x128xf32>
    %cst = arith.constant dense<0.000000e+00> : vector<8x128xf32>
    %7 = vector.multi_reduction <add>, %6, %cst [0] : vector<3x8x128xf32> to vector<8x128xf32>
    %8 = arith.addf %5, %7 : vector<8x128xf32>
    %c0_4 = arith.constant 0 : index
    %c0_5 = arith.constant 0 : index
    %9 = vector.load %arg4[%c0_4, %c0_5] : memref<8x128xf32, #tpu.memory_space<vmem>>, vector<8x128xf32>
    tpu.vector_store %arg4[%c0_4, %c0_5], %8 {strides = array<i32>} : memref<8x128xf32, #tpu.memory_space<vmem>>, vector<8x128xf32>,
    %c0_i32_6 = arith.constant 0 : i32
    %10 = arith.cmpi eq, %arg1, %c0_i32_6 : i32
    %11 = arith.extui %10 : i1 to i32
    %c0_i32_7 = arith.constant 0 : i32
    %12 = arith.cmpi ne, %11, %c0_i32_7 : i32
    scf.if %12 {
      %c0_8 = arith.constant 0 : index
      %c0_9 = arith.constant 0 : index
      %13 = vector.load %arg4[%c0_8, %c0_9] : memref<8x128xf32, #tpu.memory_space<vmem>>, vector<8x128xf32>
      %cst_10 = arith.constant dense<0.000000e+00> : vector<128xf32>
      %14 = vector.multi_reduction <add>, %13, %cst_10 [0] : vector<8x128xf32> to vector<128xf32>
      %15 = vector.shape_cast %14 : vector<128xf32> to vector<1x128xf32>
      %cst_11 = arith.constant 1.250000e-01 : f32
      %16 = vector.broadcast %cst_11 : f32 to vector<1x128xf32>
      %17 = arith.mulf %15, %16 : vector<1x128xf32>
      %cst_12 = arith.constant 0.333333343 : f32
      %18 = vector.broadcast %cst_12 : f32 to vector<1x128xf32>
      %19 = arith.mulf %17, %18 : vector<1x128xf32>
      %20 = vector.shape_cast %19 : vector<1x128xf32> to vector<1x1x128xf32>
      %c0_13 = arith.constant 0 : index
      %c0_14 = arith.constant 0 : index
      %c0_15 = arith.constant 0 : index
      %21 = vector.load %arg3[%c0_13, %c0_14, %c0_15] : memref<1x1x128xf32, #tpu.memory_space<vmem>>, vector<1x1x128xf32>
      tpu.vector_store %arg3[%c0_13, %c0_14, %c0_15], %20 {strides = array<i32>} : memref<1x1x128xf32, #tpu.memory_space<vmem>>, vector<1x1x128xf32>,
    } else {
    }
    return
  }
  func.func @transform_0(%arg0: i32, %arg1: i32) -> (i32, i32) {
    %c1_i32 = arith.constant 1 : i32
    %0 = arith.muli %arg0, %c1_i32 : i32
    %1 = arith.addi %0, %arg1 : i32
    %c0_i32 = arith.constant 0 : i32
    %c0_i32_0 = arith.constant 0 : i32
    return %1, %c0_i32 : i32, i32
  }
  func.func @transform_1(%arg0: i32, %arg1: i32) -> (i32, i32, i32) {
    %c0_i32 = arith.constant 0 : i32
    %c0_i32_0 = arith.constant 0 : i32
    %c0_i32_1 = arith.constant 0 : i32
    return %arg0, %c0_i32, %c0_i32_0 : i32, i32, i32
  }
}

</mosaic_0001>

<bundles_post_ra>
// kernel: tpu_custom_call.1
= control target key start
LH: loop header
LB: loop body
LE: loop exit
PB: predicated region body
PF: predicated region fallthrough
CT: control target
= control target key end

     0   :  { %6 = vsyncpa [#allocation4], 0  ;;  %s141_s0 = inlined_call_operand.hbm [shape: f32[24,128], index: 0, kind: input, shape index: {}]   ;;  %s142_s1 = inlined_call_operand.hbm [shape: f32[1,1,128], index: 1, kind: output, shape index: {}]  }
   0x1   :  { %7 = vsyncpa [#allocation5], 0  ;;  %s121_s6 = smov [#allocation3]  }
   0x2   :  { %s17_s7 = sshll.u32 %s121_s6, 4  ;;  %s18_s7 = int_to_ptr.vmem [resolvable:$true] %s17_s7 }
   0x3   :  { %s85_s8 = scalar_lea.vmem %s18_s7, 384  ;;  %p90_p1 = scmp.lt.s32.totalorder %s18_s7, %s18_s7 }
   0x4   :  { %p86_p0 = scmp.ne.s32.totalorder %s18_s7, %s85_s8  ;;  %p91_p2 = scmp.lt.s32.totalorder %s85_s8, %s85_s8 }
   0x6   :  { %p92_p3 = por %p91_p2, %p90_p1 }
   0x8   :  { %p93_p4 = pnand %p92_p3, %p86_p0 }
   0xa   :  { %96 = shalt.err (!%p93_p4)
}
   0xb   :  { %s122_s9 = smov 128   ;;  %s123_s10 = smov 8  }
   0xc   :  { %23 = dma.hbm_to_vmem [thread:$0]  %s141_s0, 384, %s18_s7, [#allocation4], %s122_s9, %s122_s9, %s123_s10  }
   0xd   :  { %117 = dma.done.wait [#allocation4], 384  }
   0xe   :  { %118 = vsyncadd [#allocation4], 4294966912  ;;  %v34_v0 = vld [vmem:[#allocation3] sm:$0xff]  ;;  %v35_v1 = vld [vmem:[#allocation3 + $0x8] sm:$0xff]  ;;  %s124_s13 = smov [#allocation6]  }
   0xf   :  { %v36_v2 = vld [vmem:[#allocation3 + $0x10] sm:$0xff]  ;;  %v37_v3 = vmul.f32 %v34_v0, %v34_v0  ;;  %v38_v4 = vmul.f32 %v35_v1, %v35_v1  ;;  %s64_s14 = sshll.u32 %s124_s13, 4  ;;  %s65_s14 = int_to_ptr.vmem [resolvable:$true] %s64_s14 }
  0x10   :  { %v39_v5 = vmul.f32 %v36_v2, %v36_v2  ;;  %s97_s0 = scalar_lea.vmem %s65_s14, 16  ;;  %s101_s15 = scalar_lea.vmem %s65_s14, 32 }
  0x11   :  { %v41_v6 = vadd.f32 %v38_v4, %v37_v3  ;;  %p98_p5 = scmp.ne.s32.totalorder %s65_s14, %s97_s0  ;;  %p102_p6 = scmp.lt.s32.totalorder %s65_s14, %s65_s14 }
  0x12   :  { %p103_p7 = scmp.lt.s32.totalorder %s101_s15, %s97_s0 }
  0x13   :  { %v42_v7 = vadd.f32 %v41_v6, %v39_v5 }
  0x14   :  { %p104_p8 = por %p103_p7, %p102_p6 }
  0x15   :  { %v49_v8 = vrot.slane %v42_v7, 4 }
  0x16   :  { %p105_p9 = pnand %p104_p8, %p98_p5 }
  0x17   :  { %v50_v9 = vadd.f32 %v49_v8, %v42_v7 }
  0x19   :  { %v51_v10 = vrot.slane %v50_v9, 2 }
  0x1b   :  { %v52_v11 = vadd.f32 %v51_v10, %v50_v9 }
  0x1d   :  { %v53_v12 = vrot.slane %v52_v11, 1 }
  0x1f   :  { %v54_v13 = vadd.f32 %v53_v12, %v52_v11 }
  0x21   :  { %v55_v14 = vmul.f32 0.125, %v54_v13 }
  0x23   :  { %v56_v15 = vmul.f32 0.33333334, %v55_v14 }
  0x25   :  { %57 = vst [vmem:[#allocation6] sm:$0x1] %v56_v15 }
  0x26   :  { %108 = shalt.err (!%p105_p9)
}
  0x27   :  { %67 = dma.vmem_to_hbm [thread:$0]  %s65_s14, 16, %s142_s1, [#allocation5]  }
  0x28   :  { %119 = dma.done.wait [#allocation5], 16  }
  0x29   :  { %120 = vsyncadd [#allocation5], 4294967280 }
  0x2a   :  { %71 = vsyncpa [#allocation4], 1 }
  0x2b   :  { %72 = vsyncpa [#allocation5], 1 }

</bundles_post_ra>
